<compile_context>
chip_gen: v7x
topology: tpu7x:2x2x1
jax: 0.10.0
libtpu: 0.0.40
codegen_flags: <defaults>
</compile_context>

<pallas_src>
import functools

import jax
import jax.numpy as jnp
from jax.experimental import pallas as pl
from jax.experimental.pallas import tpu as pltpu


def _feature_projection_kernel(x_ref, gamma_ref, beta_ref, w_ref, b_ref,
                               proj_ref, norm_ref, *, eps, mxu_dtype):
    # ---- LayerNorm over the last axis, statistics in f32 ------------------
    x = x_ref[...].astype(jnp.float32)                        # (tm, C)
    gamma = gamma_ref[...].astype(jnp.float32)                 # (1, C)
    beta = beta_ref[...].astype(jnp.float32)                   # (1, C)

    mean = jnp.mean(x, axis=-1, keepdims=True)
    xc = x - mean
    var = jnp.mean(xc * xc, axis=-1, keepdims=True)            # biased, like torch
    inv = jax.lax.rsqrt(var + eps)
    norm = xc * inv * gamma + beta                              # (tm, C), f32
    norm_ref[...] = norm.astype(norm_ref.dtype)

    # ---- Linear projection on the MXU: bf16 operands, f32 accumulate ------
    w = w_ref[...]                                              # (C, H), mxu_dtype
    proj = jnp.dot(norm.astype(mxu_dtype), w,
                   preferred_element_type=jnp.float32)          # (tm, H), f32
    proj = proj + b_ref[...].astype(jnp.float32)

    # Dropout: inference mode -> identity.
    # TODO(synk): training-mode dropout (pltpu.prng_random_bits mask) not emitted.
    proj_ref[...] = proj.astype(proj_ref.dtype)


def _round_up(x, m):
    return (x + m - 1) // m * m


def _pick_block_rows(rows, C, H, in_bytes, out_bytes, w_bytes, sublane,
                     budget_bytes=40 * 1024 * 1024):
    """Largest row tile whose double-buffered footprint fits the VMEM budget."""
    # Constant-index-map operands (W, gamma, beta, bias) are resident; count
    # the default 2 buffers for them conservatively.
    # TODO(synk): pipeline_mode=pl.Buffered(1) on the W spec would drop its
    # second buffer (small win; skipped to keep the lowering path simple).
    fixed = 2 * (C * H * w_bytes) + 2 * (2 * C + H) * 4
    best = sublane
    for tm in (2048, 1024, 512, 256, 128, 64, 32, 16, 8):
        if tm % sublane:
            continue
        per_tile = 2 * tm * (C * in_bytes + C * out_bytes + H * out_bytes)
        if fixed + per_tile <= budget_bytes:
            best = tm
            break
    if best >= rows:
        # Single block covering the whole (possibly unaligned) row extent.
        return rows
    return best


def wav2vec2_feature_projection(hidden_states, gamma, beta, weight_t, bias, *,
                                eps=1e-5, block_rows=None,
                                mxu_dtype=jnp.bfloat16):
    """Fused LayerNorm + Linear (+ eval-mode Dropout).

    hidden_states: (B, T, C)   channels-last conv features
    gamma, beta:   (C,)        LayerNorm affine params
    weight_t:      (C, H)      projection weight, PRE-TRANSPOSED from torch's (H, C)
    bias:          (H,)        projection bias
    Returns (proj (B, T, H), norm (B, T, C)).
    """
    B, T, C = hidden_states.shape
    assert weight_t.shape[0] == C
    H = weight_t.shape[1]
    rows = B * T

    out_dtype = hidden_states.dtype
    in_bytes = jnp.dtype(hidden_states.dtype).itemsize
    out_bytes = jnp.dtype(out_dtype).itemsize
    w_bytes = jnp.dtype(mxu_dtype).itemsize
    sublane = 8 if in_bytes >= 4 else 16

    if block_rows is None:
        block_rows = _pick_block_rows(rows, C, H, in_bytes, out_bytes, w_bytes,
                                      sublane)
    block_rows = min(block_rows, rows)
    assert block_rows == rows or block_rows % sublane == 0

    # No host-side padding: partial last block is masked by Pallas.
    grid = (pl.cdiv(rows, block_rows),)

    x2d = hidden_states.reshape(rows, C)
    w = weight_t.astype(mxu_dtype)          # (C, H), half the bytes into VMEM
    gamma2 = gamma.reshape(1, C)
    beta2 = beta.reshape(1, C)
    bias2 = bias.reshape(1, H)

    kernel = functools.partial(_feature_projection_kernel,
                               eps=float(eps), mxu_dtype=mxu_dtype)

    proj, norm = pl.pallas_call(
        kernel,
        out_shape=(
            jax.ShapeDtypeStruct((rows, H), out_dtype),
            jax.ShapeDtypeStruct((rows, C), out_dtype),
        ),
        grid_spec=pltpu.PrefetchScalarGridSpec(
            num_scalar_prefetch=0,
            grid=grid,
            in_specs=[
                pl.BlockSpec((block_rows, C), lambda i: (i, 0)),   # x rows
                pl.BlockSpec((1, C), lambda i: (0, 0)),            # gamma
                pl.BlockSpec((1, C), lambda i: (0, 0)),            # beta
                pl.BlockSpec((C, H), lambda i: (0, 0)),            # W (resident)
                pl.BlockSpec((1, H), lambda i: (0, 0)),            # b
            ],
            out_specs=[
                pl.BlockSpec((block_rows, H), lambda i: (i, 0)),   # projection
                pl.BlockSpec((block_rows, C), lambda i: (i, 0)),   # layernorm out
            ],
        ),
        compiler_params=pltpu.CompilerParams(
            dimension_semantics=("parallel",),        # shards rows across TCs on v7x
            vmem_limit_bytes=64 * 1024 * 1024,        # above 32 MiB scoped default
        ),
    )(x2d, gamma2, beta2, w, bias2)

    proj = proj.reshape(B, T, H)
    norm = norm.reshape(B, T, C)
    return proj, norm


def _reference(hidden_states, gamma, beta, weight, bias, eps=1e-5):
    """Pure-JAX f32 reference of the PyTorch module (weight in torch (H, C) layout)."""
    x = hidden_states.astype(jnp.float32)
    mean = jnp.mean(x, axis=-1, keepdims=True)
    var = jnp.mean((x - mean) ** 2, axis=-1, keepdims=True)
    norm = (x - mean) / jnp.sqrt(var + eps) * gamma + beta
    proj = norm @ weight.T.astype(jnp.float32) + bias
    return proj, norm


if __name__ == "__main__":
    # Small config, but lane-dense (C and H are multiples of 128):
    # conv_dim[-1] = 128, hidden_size = 256, layer_norm_eps = 1e-5.
    B, T, C, H = 2, 24, 128, 256
    eps = 1e-5

    key = jax.random.PRNGKey(0)
    k_x, k_g, k_b, k_w, k_bb = jax.random.split(key, 5)

    hidden_states = jax.random.normal(k_x, (B, T, C), dtype=jnp.float32)
    gamma = jax.random.normal(k_g, (C,), dtype=jnp.float32) * 0.1 + 1.0
    beta = jax.random.normal(k_b, (C,), dtype=jnp.float32) * 0.1
    weight = jax.random.normal(k_w, (H, C), dtype=jnp.float32) / jnp.sqrt(C)  # torch layout
    bias = jax.random.normal(k_bb, (H,), dtype=jnp.float32) * 0.01

    # One-time parameter prep (outside the per-call hot path): store the
    # projection weight pre-transposed as (C, H).
    weight_t = weight.T

    proj, norm = wav2vec2_feature_projection(hidden_states, gamma, beta,
                                             weight_t, bias, eps=eps)
    jax.block_until_ready((proj, norm))

    proj_ref, norm_ref = _reference(hidden_states, gamma, beta, weight, bias,
                                    eps=eps)
    assert proj.shape == (B, T, H) and norm.shape == (B, T, C)
    # norm is computed/stored in f32 -> tight tolerance.
    assert jnp.allclose(norm, norm_ref, atol=1e-4, rtol=1e-4)
    # proj uses bf16 MXU operands with f32 accumulation -> bf16-level tolerance.
    assert jnp.allclose(proj, proj_ref, atol=3e-2, rtol=3e-2)

    print("KERNEL_OK")
</pallas_src>

<mosaic_0001>
module attributes {stable_mosaic.version = 11 : i64} {
  func.func @_feature_projection_kernel(%arg0: i32, %arg1: memref<48x128xf32, #tpu.memory_space<vmem>>, %arg2: memref<1x128xf32, #tpu.memory_space<vmem>>, %arg3: memref<1x128xf32, #tpu.memory_space<vmem>>, %arg4: memref<128x256xbf16, #tpu.memory_space<vmem>>, %arg5: memref<1x256xf32, #tpu.memory_space<vmem>>, %arg6: memref<48x256xf32, #tpu.memory_space<vmem>>, %arg7: memref<48x128xf32, #tpu.memory_space<vmem>>) attributes {dimension_semantics = [#tpu.dimension_semantics<parallel>], iteration_bounds = array<i64: 1>, scalar_prefetch = 0 : i64, scratch_operands = 0 : i64, tpu.core_type = #tpu.core_type<tc>, window_params = [{transform_indices = @transform_0, window_bounds = array<i64: 48, 128>}, {pipeline_mode = #tpu.pipeline_mode<synchronous>, transform_indices = @transform_1, window_bounds = array<i64: 1, 128>}, {pipeline_mode = #tpu.pipeline_mode<synchronous>, transform_indices = @transform_2, window_bounds = array<i64: 1, 128>}, {pipeline_mode = #tpu.pipeline_mode<synchronous>, transform_indices = @transform_3, window_bounds = array<i64: 128, 256>}, {pipeline_mode = #tpu.pipeline_mode<synchronous>, transform_indices = @transform_4, window_bounds = array<i64: 1, 256>}, {transform_indices = @transform_5, window_bounds = array<i64: 48, 256>}, {transform_indices = @transform_6, window_bounds = array<i64: 48, 128>}]} {
    %c0 = arith.constant 0 : index
    %c0_0 = arith.constant 0 : index
    %0 = vector.load %arg1[%c0, %c0_0] : memref<48x128xf32, #tpu.memory_space<vmem>>, vector<48x128xf32>
    %c0_1 = arith.constant 0 : index
    %c0_2 = arith.constant 0 : index
    %1 = vector.load %arg2[%c0_1, %c0_2] : memref<1x128xf32, #tpu.memory_space<vmem>>, vector<1x128xf32>
    %c0_3 = arith.constant 0 : index
    %c0_4 = arith.constant 0 : index
    %2 = vector.load %arg3[%c0_3, %c0_4] : memref<1x128xf32, #tpu.memory_space<vmem>>, vector<1x128xf32>
    %cst = arith.constant dense<0.000000e+00> : vector<48xf32>
    %3 = vector.multi_reduction <add>, %0, %cst [1] : vector<48x128xf32> to vector<48xf32>
    %4 = vector.shape_cast %3 : vector<48xf32> to vector<48x1xf32>
    %cst_5 = arith.constant 1.280000e+02 : f32
    %5 = vector.broadcast %cst_5 : f32 to vector<48x1xf32>
    %6 = arith.divf %4, %5 : vector<48x1xf32>
    %7 = vector.broadcast %6 : vector<48x1xf32> to vector<48x128xf32>
    %8 = arith.subf %0, %7 : vector<48x128xf32>
    %9 = arith.mulf %8, %8 : vector<48x128xf32>
    %cst_6 = arith.constant dense<0.000000e+00> : vector<48xf32>
    %10 = vector.multi_reduction <add>, %9, %cst_6 [1] : vector<48x128xf32> to vector<48xf32>
    %11 = vector.shape_cast %10 : vector<48xf32> to vector<48x1xf32>
    %cst_7 = arith.constant 1.280000e+02 : f32
    %12 = vector.broadcast %cst_7 : f32 to vector<48x1xf32>
    %13 = arith.divf %11, %12 : vector<48x1xf32>
    %cst_8 = arith.constant 9.99999974E-6 : f32
    %14 = vector.broadcast %cst_8 : f32 to vector<48x1xf32>
    %15 = arith.addf %13, %14 : vector<48x1xf32>
    %16 = math.rsqrt %15 : vector<48x1xf32>
    %17 = vector.broadcast %16 : vector<48x1xf32> to vector<48x128xf32>
    %18 = arith.mulf %8, %17 : vector<48x128xf32>
    %19 = vector.broadcast %1 : vector<1x128xf32> to vector<48x128xf32>
    %20 = arith.mulf %18, %19 : vector<48x128xf32>
    %21 = vector.broadcast %2 : vector<1x128xf32> to vector<48x128xf32>
    %22 = arith.addf %20, %21 : vector<48x128xf32>
    %c0_9 = arith.constant 0 : index
    %c0_10 = arith.constant 0 : index
    %23 = vector.load %arg7[%c0_9, %c0_10] : memref<48x128xf32, #tpu.memory_space<vmem>>, vector<48x128xf32>
    tpu.vector_store %arg7[%c0_9, %c0_10], %22 {strides = array<i32>} : memref<48x128xf32, #tpu.memory_space<vmem>>, vector<48x128xf32>,
    %c0_11 = arith.constant 0 : index
    %c0_12 = arith.constant 0 : index
    %24 = vector.load %arg4[%c0_11, %c0_12] : memref<128x256xbf16, #tpu.memory_space<vmem>>, vector<128x256xbf16>
    %25 = arith.truncf %22 : vector<48x128xf32> to vector<48x128xbf16>
    %cst_13 = arith.constant dense<0.000000e+00> : vector<48x256xf32>
    %26 = tpu.matmul %25, %24, %cst_13 {dimension_numbers = #tpu.dot_dimension_numbers<[1], [0], [0], [1], [0, 0, 1, 1], [], []>} : vector<48x128xbf16>, vector<128x256xbf16>, vector<48x256xf32> -> vector<48x256xf32>
    %c0_14 = arith.constant 0 : index
    %c0_15 = arith.constant 0 : index
    %27 = vector.load %arg5[%c0_14, %c0_15] : memref<1x256xf32, #tpu.memory_space<vmem>>, vector<1x256xf32>
    %28 = vector.broadcast %27 : vector<1x256xf32> to vector<48x256xf32>
    %29 = arith.addf %26, %28 : vector<48x256xf32>
    %c0_16 = arith.constant 0 : index
    %c0_17 = arith.constant 0 : index
    %30 = vector.load %arg6[%c0_16, %c0_17] : memref<48x256xf32, #tpu.memory_space<vmem>>, vector<48x256xf32>
    tpu.vector_store %arg6[%c0_16, %c0_17], %29 {strides = array<i32>} : memref<48x256xf32, #tpu.memory_space<vmem>>, vector<48x256xf32>,
    return
  }
  func.func @transform_0(%arg0: i32) -> (i32, i32) {
    %c0_i32 = arith.constant 0 : i32
    %c0_i32_0 = arith.constant 0 : i32
    return %arg0, %c0_i32 : i32, i32
  }
  func.func @transform_1(%arg0: i32) -> (i32, i32) {
    %c0_i32 = arith.constant 0 : i32
    %c0_i32_0 = arith.constant 0 : i32
    %c0_i32_1 = arith.constant 0 : i32
    return %c0_i32, %c0_i32_0 : i32, i32
  }
  func.func @transform_2(%arg0: i32) -> (i32, i32) {
    %c0_i32 = arith.constant 0 : i32
    %c0_i32_0 = arith.constant 0 : i32
    %c0_i32_1 = arith.constant 0 : i32
    return %c0_i32, %c0_i32_0 : i32, i32
  }
  func.func @transform_3(%arg0: i32) -> (i32, i32) {
    %c0_i32 = arith.constant 0 : i32
    %c0_i32_0 = arith.constant 0 : i32
    %c0_i32_1 = arith.constant 0 : i32
    return %c0_i32, %c0_i32_0 : i32, i32
  }
  func.func @transform_4(%arg0: i32) -> (i32, i32) {
    %c0_i32 = arith.constant 0 : i32
    %c0_i32_0 = arith.constant 0 : i32
    %c0_i32_1 = arith.constant 0 : i32
    return %c0_i32, %c0_i32_0 : i32, i32
  }
  func.func @transform_5(%arg0: i32) -> (i32, i32) {
    %c0_i32 = arith.constant 0 : i32
    %c0_i32_0 = arith.constant 0 : i32
    return %arg0, %c0_i32 : i32, i32
  }
  func.func @transform_6(%arg0: i32) -> (i32, i32) {
    %c0_i32 = arith.constant 0 : i32
    %c0_i32_0 = arith.constant 0 : i32
    return %arg0, %c0_i32 : i32, i32
  }
}

</mosaic_0001>

<bundles_post_ra>
// kernel: tpu_custom_call.1
= control target key start
LH: loop header
LB: loop body
LE: loop exit
PB: predicated region body
PF: predicated region fallthrough
CT: control target
= control target key end

     0   :  { %12 = vsyncpa [#allocation3], 0  ;;  %s832_s0 = inlined_call_operand.hbm [shape: f32[48,128], index: 0, kind: input, shape index: {}]   ;;  %s833_s1 = inlined_call_operand.hbm [shape: f32[1,128], index: 1, kind: input, shape index: {}]   ;;  %s834_s2 = inlined_call_operand.hbm [shape: f32[1,128], index: 2, kind: input, shape index: {}]   ;;  %s835_s3 = inlined_call_operand.hbm [shape: bf16[128,256], index: 3, kind: input, shape index: {}]   ;;  %s836_s4 = inlined_call_operand.hbm [shape: f32[1,256], index: 4, kind: input, shape index: {}]   ;;  %s837_s5 = inlined_call_operand.hbm [shape: f32[48,256], index: 5, kind: output, shape index: {0}]   ;;  %s838_s6 = inlined_call_operand.hbm [shape: f32[48,128], index: 6, kind: output, shape index: {1}]  }
   0x1   :  { %13 = vsyncpa [#allocation6], 0 }
   0x2   :  { %14 = vsyncpa [#allocation9], 0 }
   0x3   :  { %15 = vsyncpa [#allocation4], 0 }
   0x4   :  { %16 = vsyncpa [#allocation13], 0  ;;  %s659_s21 = smov [#allocation5]   ;;  %s495_s25 = scalar_lea.hbm %s833_s1, 16 }
   0x5   :  { %s35_s22 = sshll.u32 %s659_s21, 4  ;;  %p496_p0 = scmp.ne.s32.totalorder %s833_s1, %s495_s25  ;;  %s36_s22 = int_to_ptr.vmem [resolvable:$true] %s35_s22 }
   0x6   :  { %p499_p1 = scmp.lt.u32.totalorder %s495_s25, %s833_s1 }
   0x8   :  { %p501_p2 = pnand %p499_p1, %p496_p0 }
   0xa   :  { %504 = shalt.err (!%p501_p2)
}
   0xb   :  { %s505_s30 = scalar_lea.vmem %s36_s22, 16  ;;  %s509_s7 = scalar_lea.vmem %s36_s22, 32 }
   0xc   :  { %p506_p3 = scmp.ne.s32.totalorder %s36_s22, %s505_s30  ;;  %p510_p4 = scmp.lt.s32.totalorder %s36_s22, %s36_s22 }
   0xd   :  { %p511_p5 = scmp.lt.s32.totalorder %s509_s7, %s505_s30 }
   0xf   :  { %p512_p6 = por %p511_p5, %p510_p4 }
  0x11   :  { %p513_p7 = pnand %p512_p6, %p506_p3 }
  0x13   :  { %516 = shalt.err (!%p513_p7)
}
  0x14   :  { %38 = dma.hbm_to_vmem [thread:$0]  %s833_s1, 16, %s36_s22, [#allocation6]  }
  0x15   :  { %s660_s10 = smov [#allocation8]   ;;  %s661_s12 = smov [#allocation2]  }
  0x16   :  { %s54_s11 = sshll.u32 %s660_s10, 4  ;;  %s22_s13 = sshll.u32 %s661_s12, 4  ;;  %s55_s11 = int_to_ptr.vmem [resolvable:$true] %s54_s11  ;;  %s23_s13 = int_to_ptr.vmem [resolvable:$true] %s22_s13 }
  0x17   :  { %s517_s16 = scalar_lea.hbm %s835_s3, 2048 }
  0x18   :  { %p518_p8 = scmp.ne.s32.totalorder %s835_s3, %s517_s16  ;;  %p521_p9 = scmp.lt.u32.totalorder %s517_s16, %s835_s3 }
  0x1a   :  { %p523_p10 = pnand %p521_p9, %p518_p8 }
  0x1c   :  { %526 = shalt.err (!%p523_p10)
}
  0x1d   :  { %s527_s1 = scalar_lea.vmem %s55_s11, 2048  ;;  %p532_p12 = scmp.lt.s32.totalorder %s55_s11, %s55_s11 }
  0x1e   :  { %p528_p11 = scmp.ne.s32.totalorder %s55_s11, %s527_s1  ;;  %p533_p13 = scmp.lt.s32.totalorder %s527_s1, %s527_s1 }
  0x20   :  { %p534_p0 = por %p533_p13, %p532_p12 }
  0x22   :  { %p535_p1 = pnand %p534_p0, %p528_p11 }
  0x24   :  { %538 = shalt.err (!%p535_p1)
}
  0x25   :  { %s662_s21 = smov 128   ;;  %s663_s22 = smov 8  }
  0x26   :  { %60 = dma.hbm_to_vmem [thread:$0]  %s835_s3, 2048, %s55_s11, [#allocation9], %s662_s21, %s662_s21, %s663_s22  }
  0x27   :  { %s539_s27 = scalar_lea.hbm %s832_s0, 768 }
  0x28   :  { %p540_p2 = scmp.ne.s32.totalorder %s832_s0, %s539_s27  ;;  %p543_p3 = scmp.lt.u32.totalorder %s539_s27, %s832_s0 }
  0x2a   :  { %p545_p4 = pnand %p543_p3, %p540_p2 }
  0x2c   :  { %548 = shalt.err (!%p545_p4)
}
  0x2d   :  { %s549_s8 = scalar_lea.vmem %s23_s13, 768  ;;  %p554_p6 = scmp.lt.s32.totalorder %s23_s13, %s23_s13 }
  0x2e   :  { %p550_p5 = scmp.ne.s32.totalorder %s23_s13, %s549_s8  ;;  %p555_p7 = scmp.lt.s32.totalorder %s549_s8, %s549_s8 }
  0x30   :  { %p556_p8 = por %p555_p7, %p554_p6 }
  0x32   :  { %p557_p9 = pnand %p556_p8, %p550_p5 }
  0x34   :  { %560 = shalt.err (!%p557_p9)
}
  0x35   :  { %28 = dma.hbm_to_vmem [thread:$0]  %s832_s0, 768, %s23_s13, [#allocation3], %s662_s21, %s662_s21, %s663_s22  }
  0x36   :  { %s664_s10 = smov [#allocation7]   ;;  %s665_s12 = smov [#allocation10]  }
  0x37   :  { %s45_s11 = sshll.u32 %s664_s10, 4  ;;  %s67_s14 = sshll.u32 %s665_s12, 4  ;;  %s46_s11 = int_to_ptr.vmem [resolvable:$true] %s45_s11  ;;  %s68_s14 = int_to_ptr.vmem [resolvable:$true] %s67_s14 }
  0x38   :  { %s561_s17 = scalar_lea.hbm %s834_s2, 16 }
  0x39   :  { %p562_p10 = scmp.ne.s32.totalorder %s834_s2, %s561_s17  ;;  %p565_p11 = scmp.lt.u32.totalorder %s561_s17, %s834_s2 }
  0x3b   :  { %p567_p12 = pnand %p565_p11, %p562_p10 }
  0x3d   :  { %570 = shalt.err (!%p567_p12)
}
  0x3e   :  { %s571_s0 = scalar_lea.vmem %s46_s11, 16  ;;  %s575_s13 = scalar_lea.vmem %s46_s11, 32 }
  0x3f   :  { %p572_p13 = scmp.ne.s32.totalorder %s46_s11, %s571_s0  ;;  %p576_p0 = scmp.lt.s32.totalorder %s46_s11, %s46_s11 }
  0x40   :  { %p577_p1 = scmp.lt.s32.totalorder %s575_s13, %s571_s0 }
  0x42   :  { %p578_p2 = por %p577_p1, %p576_p0 }
  0x44   :  { %p579_p3 = pnand %p578_p2, %p572_p13 }
  0x46   :  { %582 = shalt.err (!%p579_p3)
}
  0x47   :  { %48 = dma.hbm_to_vmem [thread:$0]  %s834_s2, 16, %s46_s11, [#allocation6]  }
  0x48   :  { %s583_s27 = scalar_lea.hbm %s836_s4, 32 }
  0x49   :  { %p584_p4 = scmp.ne.s32.totalorder %s836_s4, %s583_s27  ;;  %p587_p5 = scmp.lt.u32.totalorder %s583_s27, %s836_s4 }
  0x4b   :  { %p589_p6 = pnand %p587_p5, %p584_p4 }
  0x4d   :  { %592 = shalt.err (!%p589_p6)
}
  0x4e   :  { %s593_s8 = scalar_lea.vmem %s68_s14, 32  ;;  %p598_p8 = scmp.lt.s32.totalorder %s68_s14, %s68_s14 }
  0x4f   :  { %p594_p7 = scmp.ne.s32.totalorder %s68_s14, %s593_s8  ;;  %p599_p9 = scmp.lt.s32.totalorder %s593_s8, %s593_s8 }
  0x51   :  { %p600_p10 = por %p599_p9, %p598_p8 }
  0x53   :  { %p601_p11 = pnand %p600_p10, %p594_p7 }
  0x55   :  { %604 = shalt.err (!%p601_p11)
}
  0x56   :  { %70 = dma.hbm_to_vmem [thread:$0]  %s836_s4, 32, %s68_s14, [#allocation9]  }
  0x57   :  { %649 = dma.done.wait [#allocation3], 768  }
  0x58   :  { %650 = vsyncadd [#allocation3], 4294966528 }
  0x59   :  { %651 = dma.done.wait [#allocation6], 32  }
  0x5a   :  { %652 = vsyncadd [#allocation6], 4294967264 }
  0x5b   :  { %653 = dma.done.wait [#allocation9], 2080  }
  0x5c   :  { %654 = vsyncadd [#allocation9], 4294965216  ;;  %v89_v0 = vld [vmem:[#allocation2 + $0x10] sm:$0xff]  ;;  %v87_v1 = vld [vmem:[#allocation2] sm:$0xff]  ;;  %v666_v45 = vmov 0   ;;  %s667_s4 = smov [#allocation12]  }
  0x5d   :  { %99 = vadd.xlane.f32.xlu0 %v89_v0  ;;  %v90_v2 = vld [vmem:[#allocation2 + $0x18] sm:$0xff]  ;;  %95 = vadd.xlane.f32.xlu1 %v87_v1  ;;  %v88_v3 = vld [vmem:[#allocation2 + $0x8] sm:$0xff]  ;;  %v91_v4 = vld [vmem:[#allocation2 + $0x20] sm:$0xff]  ;;  %s395_s9 = sshll.u32 %s667_s4, 4  ;;  %s396_s9 = int_to_ptr.vmem [resolvable:$true] %s395_s9 }
  0x5e   :  { %v92_v5 = vld [vmem:[#allocation2 + $0x28] sm:$0xff]  ;;  %v459_v6 = vld [vmem:[#allocation8 + $0x4] ss:$8 sps:$4 sm:$0xff]   ;;  %v461_v7 = vld [vmem:[#allocation8] ss:$8 sps:$4 sm:$0xff]   ;;  %345 = vmatprep.mubr.bf16.mxu1 %v666_v45  ;;  %335 = vmatprep.mubr.bf16.mxu0 %v666_v45  ;;  %s605_s10 = scalar_lea.vmem %s396_s9, 768  ;;  %p610_p13 = scmp.lt.s32.totalorder %s396_s9, %s396_s9 }
  0x5f   :  { %v462_v8 = vld [vmem:[#allocation8 + $0x14] ss:$8 sps:$4 sm:$0xff]   ;;  %431 = vmatprep.subr.bf16.mxu1 %v459_v6  ;;  %303 = vmatprep.subr.bf16.mxu0 %v459_v6  ;;  %v464_v33 = vld [vmem:[#allocation8 + $0x10] ss:$8 sps:$4 sm:$0xff]   ;;  %v465_v34 = vld [vmem:[#allocation8 + $0x24] ss:$8 sps:$4 sm:$0xff]   ;;  %p606_p12 = scmp.ne.s32.totalorder %s396_s9, %s605_s10  ;;  %p611_p0 = scmp.lt.s32.totalorder %s605_s10, %s605_s10 }
  0x60   :  { %439 = vmatpush1.bf16.msra.mxu1 %v461_v7  ;;  %304 = vmatpush1.bf16.msra.mxu0 %v461_v7  ;;  %v467_v35 = vld [vmem:[#allocation8 + $0x20] ss:$8 sps:$4 sm:$0xff]   ;;  %v468_v36 = vld [vmem:[#allocation8 + $0x34] ss:$8 sps:$4 sm:$0xff]   ;;  %v470_v37 = vld [vmem:[#allocation8 + $0x30] ss:$8 sps:$4 sm:$0xff]  }
  0x61   :  { %101 = vadd.xlane.f32.xlu0 %v90_v2  ;;  %97 = vadd.xlane.f32.xlu1 %v88_v3  ;;  %v471_v38 = vld [vmem:[#allocation8 + $0x44] ss:$8 sps:$4 sm:$0xff]   ;;  %v473_v39 = vld [vmem:[#allocation8 + $0x40] ss:$8 sps:$4 sm:$0xff]   ;;  %v474_v40 = vld [vmem:[#allocation8 + $0x54] ss:$8 sps:$4 sm:$0xff]   ;;  %p612_p1 = por %p611_p0, %p610_p13 }
  0x62   :  { %432 = vmatprep.subr.bf16.mxu1 %v462_v8  ;;  %305 = vmatprep.subr.bf16.mxu0 %v462_v8  ;;  %v476_v41 = vld [vmem:[#allocation8 + $0x50] ss:$8 sps:$4 sm:$0xff]   ;;  %v477_v42 = vld [vmem:[#allocation8 + $0x64] ss:$8 sps:$4 sm:$0xff]   ;;  %v479_v43 = vld [vmem:[#allocation8 + $0x60] ss:$8 sps:$4 sm:$0xff]  }
  0x63   :  { %v480_v44 = vld [vmem:[#allocation8 + $0x74] ss:$8 sps:$4 sm:$0xff]   ;;  %v482_v46 = vld [vmem:[#allocation8 + $0x70] ss:$8 sps:$4 sm:$0xff]   ;;  %p613_p2 = pnand %p612_p1, %p606_p12 }
  0x64   :  { %440 = vmatpush1.bf16.msra.mxu1 %v464_v33  ;;  %306 = vmatpush1.bf16.msra.mxu0 %v464_v33 }
  0x65   :  { %103 = vadd.xlane.f32.xlu0 %v91_v4  ;;  %105 = vadd.xlane.f32.xlu1 %v92_v5 }
  0x66   :  { %433 = vmatprep.subr.bf16.mxu1 %v465_v34  ;;  %307 = vmatprep.subr.bf16.mxu0 %v465_v34 }
  0x68   :  { %441 = vmatpush1.bf16.msra.mxu1 %v467_v35  ;;  %308 = vmatpush1.bf16.msra.mxu0 %v467_v35 }
  0x69   :  { %434 = vmatprep.subr.bf16.mxu1 %v468_v36  ;;  %309 = vmatprep.subr.bf16.mxu0 %v468_v36 }
  0x6c   :  { %442 = vmatpush1.bf16.msra.mxu1 %v470_v37  ;;  %310 = vmatpush1.bf16.msra.mxu0 %v470_v37 }
  0x6d   :  { %435 = vmatprep.subr.bf16.mxu1 %v471_v38  ;;  %311 = vmatprep.subr.bf16.mxu0 %v471_v38 }
  0x70   :  { %443 = vmatpush1.bf16.msra.mxu1 %v473_v39  ;;  %312 = vmatpush1.bf16.msra.mxu0 %v473_v39 }
  0x71   :  { %436 = vmatprep.subr.bf16.mxu1 %v474_v40  ;;  %313 = vmatprep.subr.bf16.mxu0 %v474_v40 }
  0x74   :  { %444 = vmatpush1.bf16.msra.mxu1 %v476_v41  ;;  %314 = vmatpush1.bf16.msra.mxu0 %v476_v41 }
  0x75   :  { %437 = vmatprep.subr.bf16.mxu1 %v477_v42  ;;  %315 = vmatprep.subr.bf16.mxu0 %v477_v42 }
  0x78   :  { %445 = vmatpush1.bf16.msra.mxu1 %v479_v43  ;;  %316 = vmatpush1.bf16.msra.mxu0 %v479_v43 }
  0x79   :  { %438 = vmatprep.subr.bf16.mxu1 %v480_v44  ;;  %317 = vmatprep.subr.bf16.mxu0 %v480_v44 }
  0x7c   :  { %446 = vmatpush1.bf16.msra.mxu1 %v482_v46  ;;  %318 = vmatpush1.bf16.msra.mxu0 %v482_v46 }
  0xea   :  { %v100_v9 = vpop.xlane.xlu0 %99  ;;  %v96_v10 = vpop.xlane.xlu1 %95 }
  0xeb   :  { %v110_v11 = vmul.f32 0.0078125, %v100_v9  ;;  %v108_v12 = vmul.f32 0.0078125, %v96_v10 }
  0xed   :  { %v772_v13 = vsub.f32 %v89_v0, %v110_v11  ;;  %v774_v14 = vsub.f32 %v87_v1, %v108_v12 }
  0xee   :  { %v102_v15 = vpop.xlane.xlu0 %101  ;;  %v98_v16 = vpop.xlane.xlu1 %97 }
  0xef   :  { %v111_v17 = vmul.f32 0.0078125, %v102_v15  ;;  %v122_v18 = vmul.f32 %v772_v13, %v772_v13  ;;  %v109_v19 = vmul.f32 0.0078125, %v98_v16  ;;  %v120_v22 = vmul.f32 %v774_v14, %v774_v14 }
  0xf1   :  { %v778_v20 = vsub.f32 %v90_v2, %v111_v17  ;;  %130 = vadd.xlane.f32.xlu0 %v122_v18  ;;  %v780_v21 = vsub.f32 %v88_v3, %v109_v19  ;;  %v413_v2 = vld [vmem:[#allocation5] ss:$0 sm:$0xff] }
  0xf2   :  { %v104_v23 = vpop.xlane.xlu0 %103  ;;  %v106_v24 = vpop.xlane.xlu1 %105 }
  0xf3   :  { %v112_v25 = vmul.f32 0.0078125, %v104_v23  ;;  %v123_v26 = vmul.f32 %v778_v20, %v778_v20  ;;  %v113_v27 = vmul.f32 0.0078125, %v106_v24  ;;  %v121_v30 = vmul.f32 %v780_v21, %v780_v21 }
  0xf5   :  { %v786_v28 = vsub.f32 %v91_v4, %v112_v25  ;;  %132 = vadd.xlane.f32.xlu1 %v123_v26  ;;  %126 = vadd.xlane.f32.xlu0 %v120_v22  ;;  %v788_v29 = vsub.f32 %v92_v5, %v113_v27  ;;  %v414_v4 = vld [vmem:[#allocation7] ss:$0 sm:$0xff] }
  0xf7   :  { %v124_v31 = vmul.f32 %v786_v28, %v786_v28  ;;  %v125_v32 = vmul.f32 %v788_v29, %v788_v29 }
  0xf9   :  { %134 = vadd.xlane.f32.xlu0 %v124_v31  ;;  %128 = vadd.xlane.f32.xlu1 %v121_v30 }
  0xfd   :  { %136 = vadd.xlane.f32.xlu1 %v125_v32 }
 0x17e   :  { %v131_v47 = vpop.xlane.xlu0 %130 }
 0x17f   :  { %v140_v48 = vmul.f32 0.0078125, %v131_v47 }
 0x181   :  { %v146_v49 = vadd.f32 1e-05, %v140_v48 }
 0x182   :  { %v127_v50 = vpop.xlane.xlu0 %126  ;;  %v133_v51 = vpop.xlane.xlu1 %132 }
 0x183   :  { %483 = vrsqrt.f32 %v146_v49  ;;  %v138_v52 = vmul.f32 0.0078125, %v127_v50  ;;  %v141_v53 = vmul.f32 0.0078125, %v133_v51 }
 0x185   :  { %v144_v54 = vadd.f32 1e-05, %v138_v52  ;;  %v147_v55 = vadd.f32 1e-05, %v141_v53 }
 0x186   :  { %v135_v56 = vpop.xlane.xlu0 %134  ;;  %v129_v57 = vpop.xlane.xlu1 %128 }
 0x187   :  { %485 = vrsqrt.f32 %v144_v54  ;;  %v142_v58 = vmul.f32 0.0078125, %v135_v56  ;;  %v139_v59 = vmul.f32 0.0078125, %v129_v57 }
 0x188   :  { %487 = vrsqrt.f32 %v147_v55 }
 0x189   :  { %v148_v60 = vadd.f32 1e-05, %v142_v58  ;;  %v145_v61 = vadd.f32 1e-05, %v139_v59 }
 0x18a   :  { %v137_v62 = vpop.xlane.xlu1 %136 }
 0x18b   :  { %489 = vrsqrt.f32 %v148_v60  ;;  %v143_v63 = vmul.f32 0.0078125, %v137_v62 }
 0x18c   :  { %491 = vrsqrt.f32 %v145_v61 }
 0x18d   :  { %v484_v0 = vpop.eup %483  ;;  %v149_v1 = vadd.f32 1e-05, %v143_v63 }
 0x18e   :  { %v158_v3 = vmul.f32 %v484_v0, %v772_v13 }
 0x18f   :  { %493 = vrsqrt.f32 %v149_v1 }
 0x190   :  { %v170_v5 = vmul.f32 %v413_v2, %v158_v3 }
 0x191   :  { %v486_v6 = vpop.eup %485 }
 0x192   :  { %v488_v7 = vpop.eup %487  ;;  %v182_v8 = vadd.f32 %v414_v4, %v170_v5  ;;  %v156_v9 = vmul.f32 %v486_v6, %v774_v14 }
 0x193   :  { %v159_v10 = vmul.f32 %v488_v7, %v778_v20 }
 0x194   :  { %188 = vst [vmem:[#allocation12 + $0x10] sm:$0xff] %v182_v8  ;;  %v168_v11 = vmul.f32 %v413_v2, %v156_v9 }
 0x195   :  { %v490_v12 = vpop.eup %489  ;;  %v171_v15 = vmul.f32 %v413_v2, %v159_v10 }
 0x196   :  { %v492_v16 = vpop.eup %491  ;;  %v180_v17 = vadd.f32 %v414_v4, %v168_v11  ;;  %v160_v18 = vmul.f32 %v490_v12, %v786_v28 }
 0x197   :  { %v183_v19 = vadd.f32 %v414_v4, %v171_v15  ;;  %v157_v13 = vmul.f32 %v492_v16, %v780_v21 }
 0x198   :  { %186 = vst [vmem:[#allocation12] sm:$0xff] %v180_v17  ;;  %v172_v22 = vmul.f32 %v413_v2, %v160_v18 }
 0x199   :  { %v494_v23 = vpop.eup %493  ;;  %189 = vst [vmem:[#allocation12 + $0x18] sm:$0xff] %v183_v19  ;;  %v209_v24 = vpack.c.bf16 %v183_v19, %v182_v8  ;;  %v169_v25 = vmul.f32 %v413_v2, %v157_v13 }
 0x19a   :  { %v161_v14 = vmul.f32 %v494_v23, %v788_v29  ;;  %v184_v20 = vadd.f32 %v414_v4, %v172_v22 }
 0x19b   :  { %346 = vmatmul.mubr.bf16.vlgmr.msra.gmra.mrb[0].mxu1 %v209_v24  ;;  %v181_v26 = vadd.f32 %v414_v4, %v169_v25 }
 0x19c   :  { %355 = vmatprep.mubr.bf16.mxu1 %v666_v45  ;;  %v173_v27 = vmul.f32 %v413_v2, %v161_v14  ;;  %190 = vst [vmem:[#allocation12 + $0x20] sm:$0xff] %v184_v20 }
 0x19d   :  { %187 = vst [vmem:[#allocation12 + $0x8] sm:$0xff] %v181_v26  ;;  %v208_v28 = vpack.c.bf16 %v181_v26, %v180_v17 }
 0x19e   :  { %v185_v30 = vadd.f32 %v414_v4, %v173_v27 }
 0x19f   :  { %336 = vmatmul.mubr.bf16.vlgmr.msra.gmra.mrb[0].mxu0 %v208_v28 }
 0x1a0   :  { %191 = vst [vmem:[#allocation12 + $0x28] sm:$0xff] %v185_v30  ;;  %v210_v21 = vpack.c.bf16 %v185_v30, %v184_v20 }
 0x1a3   :  { %356 = vmatmul.mubr.bf16.gmra.mrb[4].mxu1 %v210_v21 }
 0x1a4   :  { %616 = shalt.err (!%p613_p2)
}
 0x1a5   :  { %s617_s14 = scalar_lea.hbm %s838_s6, 768 }
 0x1a6   :  { %p618_p3 = scmp.ne.s32.totalorder %s838_s6, %s617_s14  ;;  %p621_p4 = scmp.lt.u32.totalorder %s617_s14, %s838_s6 }
 0x1a8   :  { %p623_p5 = pnand %p621_p4, %p618_p3 }
 0x1aa   :  { %626 = shalt.err (!%p623_p5)
}
 0x1ab   :  { %401 = dma.vmem_to_hbm [thread:$0]  %s396_s9, 768, %s838_s6, [#allocation13], %s662_s21, %s662_s21, %s663_s22   ;;  %v213_v29 = vlaneseq  ;;  %v211_v33 = vld [vmem:[#allocation10] sm:$0x3] }
 0x1ac   :  { %s668_s6 = smov [#allocation11]  }
 0x1ad   :  { %v214_v31 = vshrl.u32 %v213_v29, 7  ;;  %s383_s21 = sshll.u32 %s668_s6, 4  ;;  %s384_s21 = int_to_ptr.vmem [resolvable:$true] %s383_s21 }
 0x1ae   :  { %s627_s22 = scalar_lea.vmem %s384_s21, 1536  ;;  %p632_p7 = scmp.lt.s32.totalorder %s384_s21, %s384_s21 }
 0x1af   :  { %v215_v32 = vsub.s32 0, %v214_v31  ;;  %v219_v34 = vsub.s32 1, %v214_v31  ;;  %p628_p6 = scmp.ne.s32.totalorder %s384_s21, %s627_s22  ;;  %p633_p8 = scmp.lt.s32.totalorder %s627_s22, %s627_s22 }
 0x1b1   :  { %v216_v35 = vrot.slane %v211_v33, %v215_v32  ;;  %v220_v36 = vrot.slane %v211_v33, %v219_v34  ;;  %p634_p9 = por %p633_p8, %p632_p7 }
 0x1b3   :  { %p635_p10 = pnand %p634_p9, %p628_p6 }
 0x26e   :  { %v347_v37 = vpop.f32.mrb[0].mxu1 }
 0x26f   :  { %v348_v38 = vadd.f32 %v347_v37, %v216_v35  ;;  %v349_v39 = vpop.f32.mrb[1].mxu1 }
 0x270   :  { %v350_v40 = vadd.f32 %v349_v39, %v220_v36  ;;  %v351_v41 = vpop.f32.mrb[2].mxu1 }
 0x271   :  { %370 = vst [vmem:[#allocation11 + $0x20] sm:$0xff] %v348_v38  ;;  %v352_v42 = vadd.f32 %v351_v41, %v216_v35  ;;  %v353_v43 = vpop.f32.mrb[3].mxu1 }
 0x272   :  { %371 = vst [vmem:[#allocation11 + $0x28] sm:$0xff] %v350_v40  ;;  %v354_v44 = vadd.f32 %v353_v43, %v220_v36  ;;  %v337_v45 = vpop.f32.mrb[0].mxu0 }
 0x273   :  { %372 = vst [vmem:[#allocation11 + $0x30] sm:$0xff] %v352_v42  ;;  %v338_v46 = vadd.f32 %v337_v45, %v216_v35  ;;  %v339_v47 = vpop.f32.mrb[1].mxu0 }
 0x274   :  { %373 = vst [vmem:[#allocation11 + $0x38] sm:$0xff] %v354_v44  ;;  %v340_v48 = vadd.f32 %v339_v47, %v220_v36  ;;  %v341_v49 = vpop.f32.mrb[2].mxu0 }
 0x275   :  { %366 = vst [vmem:[#allocation11] sm:$0xff] %v338_v46  ;;  %v342_v50 = vadd.f32 %v341_v49, %v216_v35  ;;  %v343_v51 = vpop.f32.mrb[3].mxu0 }
 0x276   :  { %367 = vst [vmem:[#allocation11 + $0x8] sm:$0xff] %v340_v48  ;;  %v344_v52 = vadd.f32 %v343_v51, %v220_v36  ;;  %v357_v53 = vpop.f32.mrb[4].mxu1 }
 0x277   :  { %368 = vst [vmem:[#allocation11 + $0x10] sm:$0xff] %v342_v50  ;;  %v358_v54 = vadd.f32 %v357_v53, %v216_v35  ;;  %v359_v55 = vpop.f32.mrb[5].mxu1 }
 0x278   :  { %369 = vst [vmem:[#allocation11 + $0x18] sm:$0xff] %v344_v52  ;;  %v360_v56 = vadd.f32 %v359_v55, %v220_v36  ;;  %v361_v57 = vpop.f32.mrb[6].mxu1 }
 0x279   :  { %374 = vst [vmem:[#allocation11 + $0x40] sm:$0xff] %v358_v54  ;;  %v362_v58 = vadd.f32 %v361_v57, %v216_v35  ;;  %v363_v59 = vpop.f32.mrb[7].mxu1 }
 0x27a   :  { %375 = vst [vmem:[#allocation11 + $0x48] sm:$0xff] %v360_v56  ;;  %v364_v60 = vadd.f32 %v363_v59, %v220_v36 }
 0x27b   :  { %376 = vst [vmem:[#allocation11 + $0x50] sm:$0xff] %v362_v58 }
 0x27c   :  { %377 = vst [vmem:[#allocation11 + $0x58] sm:$0xff] %v364_v60 }
 0x27d   :  { %638 = shalt.err (!%p635_p10)
}
 0x27e   :  { %s639_s13 = scalar_lea.hbm %s837_s5, 1536 }
 0x27f   :  { %p640_p11 = scmp.ne.s32.totalorder %s837_s5, %s639_s13  ;;  %p643_p12 = scmp.lt.u32.totalorder %s639_s13, %s837_s5 }
 0x281   :  { %p645_p13 = pnand %p643_p12, %p640_p11 }
 0x283   :  { %648 = shalt.err (!%p645_p13)
}
 0x284   :  { %s669_s27 = smov 256   ;;  %s670_s28 = smov 16  }
 0x285   :  { %389 = dma.vmem_to_hbm [thread:$0]  %s384_s21, 1536, %s837_s5, [#allocation4], %s669_s27, %s669_s27, %s670_s28  }
 0x286   :  { %655 = dma.done.wait [#allocation4], 1536  }
 0x287   :  { %656 = vsyncadd [#allocation4], 4294965760 }
 0x288   :  { %657 = dma.done.wait [#allocation13], 768  }
 0x289   :  { %658 = vsyncadd [#allocation13], 4294966528 }
 0x28a   :  { %408 = vsyncpa [#allocation3], 1 }
 0x28b   :  { %409 = vsyncpa [#allocation6], 1 }
 0x28c   :  { %410 = vsyncpa [#allocation9], 1 }
 0x28d   :  { %411 = vsyncpa [#allocation4], 1 }
 0x28e   :  { %412 = vsyncpa [#allocation13], 1 }

</bundles_post_ra>
